<compile_context>
chip_gen: v5e
topology: v5e:2x2
jax: 0.10.0
libtpu: 0.0.40
codegen_flags: <defaults>
</compile_context>

<pallas_src>
import functools

import jax
import jax.numpy as jnp
from jax.experimental import pallas as pl
from jax.experimental.pallas import tpu as pltpu


def _bce_with_logits(x, z):
    # Numerically-stable BCE-with-logits (same formulation PyTorch uses):
    #   l = max(x, 0) - x*z + log(1 + exp(-|x|))
    return jnp.maximum(x, 0.0) - x * z + jnp.log1p(jnp.exp(-jnp.abs(x)))


# ----------------------------------------------------------------------------
# Small case: whole (N, C) problem in one VMEM block, grid-less call,
# scalar result written straight to SMEM.
# ----------------------------------------------------------------------------
def _wml_small_kernel(x_ref, z_ref, w_ref, out_ref):
    x = x_ref[...].astype(jnp.float32)
    z = z_ref[...].astype(jnp.float32)
    w = w_ref[...].astype(jnp.float32)

    weighted = _bce_with_logits(x, z) * w            # (N, C) * (1, C) broadcast
    total = jnp.sum(weighted)
    inv_n = 1.0 / float(x.shape[0] * x.shape[1])     # static
    out_ref[0, 0] = total * inv_n


# ----------------------------------------------------------------------------
# Large-N case: stream (tile_n, C) row tiles over an 'arbitrary' reduction
# grid, accumulating into a resident (1, 1) SMEM scalar output.
# ----------------------------------------------------------------------------
def _wml_tiled_kernel(x_ref, z_ref, w_ref, out_ref, *, n_rows, tile_n):
    i = pl.program_id(0)

    @pl.when(i == 0)
    def _():
        out_ref[0, 0] = 0.0

    x = x_ref[...].astype(jnp.float32)
    z = z_ref[...].astype(jnp.float32)
    w = w_ref[...].astype(jnp.float32)

    weighted = _bce_with_logits(x, z) * w

    # Mask rows past the true batch size (remainder tile).  Use where() so any
    # garbage values in the padded region (incl. NaN/Inf) are fully discarded.
    row = i * tile_n + jax.lax.broadcasted_iota(jnp.int32, x.shape, 0)
    weighted = jnp.where(row < n_rows, weighted, 0.0)

    out_ref[0, 0] += jnp.sum(weighted)

    @pl.when(i == pl.num_programs(0) - 1)
    def _():
        out_ref[0, 0] = out_ref[0, 0] * (1.0 / float(n_rows * x.shape[1]))


def weighted_multilabel_loss(outputs, targets, weights, *, tile_n=512):
    """outputs, targets: (N, C) logits/labels (f32 or bf16); weights: (C,).

    Returns the scalar mean of the per-element class-weighted BCE-with-logits
    loss, matching WeightedMultilabel.forward.
    """
    n, c = outputs.shape
    w2d = weights.reshape(1, c)

    if n <= tile_n:
        out = pl.pallas_call(
            _wml_small_kernel,
            out_shape=jax.ShapeDtypeStruct((1, 1), jnp.float32),
            in_specs=[
                pl.BlockSpec(memory_space=pltpu.MemorySpace.VMEM),
                pl.BlockSpec(memory_space=pltpu.MemorySpace.VMEM),
                pl.BlockSpec(memory_space=pltpu.MemorySpace.VMEM),
            ],
            out_specs=pl.BlockSpec(memory_space=pltpu.MemorySpace.SMEM),
        )(outputs, targets, w2d)
    else:
        # Streaming reduction over row tiles.  tile_n is a multiple of 8; the
        # default 512 keeps 2 inputs x 2 pipeline buffers x (tile_n, C) tiles
        # far below the v7x scoped-VMEM limit while staying near the HBM
        # roofline.
        kernel = functools.partial(_wml_tiled_kernel, n_rows=n, tile_n=tile_n)
        out = pl.pallas_call(
            kernel,
            out_shape=jax.ShapeDtypeStruct((1, 1), jnp.float32),
            grid=(pl.cdiv(n, tile_n),),
            in_specs=[
                pl.BlockSpec((tile_n, c), lambda i: (i, 0)),
                pl.BlockSpec((tile_n, c), lambda i: (i, 0)),
                pl.BlockSpec((1, c), lambda i: (0, 0)),
            ],
            out_specs=pl.BlockSpec(memory_space=pltpu.MemorySpace.SMEM),
            compiler_params=pltpu.CompilerParams(
                dimension_semantics=("arbitrary",)),
        )(outputs, targets, w2d)
    return out[0, 0]


def _reference(outputs, targets, weights):
    x = outputs.astype(jnp.float32)
    z = targets.astype(jnp.float32)
    return jnp.mean(_bce_with_logits(x, z) * weights.reshape(1, -1).astype(jnp.float32))


if __name__ == "__main__":
    N, C = 8, 24  # small batch, num scored classes

    key = jax.random.PRNGKey(0)
    k1, k2, k3 = jax.random.split(key, 3)

    logits = jax.random.normal(k1, (N, C), dtype=jnp.float32)
    targets = (jax.random.uniform(k2, (N, C)) > 0.5).astype(jnp.float32)
    # Deterministic synthetic per-class weights (stand-in for the diagonal of
    # the PhysioNet weights.csv matrix).
    class_weights = 0.5 + jax.random.uniform(k3, (C,), dtype=jnp.float32)

    # Small (grid-less, SMEM-scalar) path.
    result = weighted_multilabel_loss(logits, targets, class_weights)
    result = jax.block_until_ready(result)
    ref = _reference(logits, targets, class_weights)
    assert jnp.allclose(result, ref, rtol=1e-5, atol=1e-5), (result, ref)

    # Streaming (tiled reduction) path, including a remainder tile (144 % 64 != 0).
    N2 = 144
    k4, k5 = jax.random.split(k1)
    logits2 = jax.random.normal(k4, (N2, C), dtype=jnp.float32)
    targets2 = (jax.random.uniform(k5, (N2, C)) > 0.5).astype(jnp.float32)
    result2 = weighted_multilabel_loss(logits2, targets2, class_weights, tile_n=64)
    result2 = jax.block_until_ready(result2)
    ref2 = _reference(logits2, targets2, class_weights)
    assert jnp.allclose(result2, ref2, rtol=1e-5, atol=1e-5), (result2, ref2)

    print("KERNEL_OK")
</pallas_src>

<mosaic_0001>
module attributes {stable_mosaic.version = 11 : i64} {
  func.func @_wml_small_kernel(%arg0: memref<8x24xf32, #tpu.memory_space<vmem>>, %arg1: memref<8x24xf32, #tpu.memory_space<vmem>>, %arg2: memref<1x24xf32, #tpu.memory_space<vmem>>, %arg3: memref<1x1xf32, #tpu.memory_space<smem>>) attributes {dimension_semantics = [], scalar_prefetch = 0 : i64, scratch_operands = 0 : i64, tpu.core_type = #tpu.core_type<tc>} {
    %c0 = arith.constant 0 : index
    %c0_0 = arith.constant 0 : index
    %0 = vector.load %arg0[%c0, %c0_0] : memref<8x24xf32, #tpu.memory_space<vmem>>, vector<8x24xf32>
    %c0_1 = arith.constant 0 : index
    %c0_2 = arith.constant 0 : index
    %1 = vector.load %arg1[%c0_1, %c0_2] : memref<8x24xf32, #tpu.memory_space<vmem>>, vector<8x24xf32>
    %c0_3 = arith.constant 0 : index
    %c0_4 = arith.constant 0 : index
    %2 = vector.load %arg2[%c0_3, %c0_4] : memref<1x24xf32, #tpu.memory_space<vmem>>, vector<1x24xf32>
    %cst = arith.constant 0.000000e+00 : f32
    %3 = vector.broadcast %cst : f32 to vector<8x24xf32>
    %4 = arith.maximumf %0, %3 : vector<8x24xf32>
    %5 = arith.mulf %0, %1 : vector<8x24xf32>
    %6 = arith.subf %4, %5 : vector<8x24xf32>
    %7 = math.absf %0 : vector<8x24xf32>
    %cst_5 = arith.constant 0.000000e+00 : f32
    %8 = vector.broadcast %cst_5 : f32 to vector<8x24xf32>
    %9 = arith.subf %8, %7 : vector<8x24xf32>
    %10 = math.exp %9 : vector<8x24xf32>
    %11 = math.log1p %10 : vector<8x24xf32>
    %12 = arith.addf %6, %11 : vector<8x24xf32>
    %13 = vector.broadcast %2 : vector<1x24xf32> to vector<8x24xf32>
    %14 = arith.mulf %12, %13 : vector<8x24xf32>
    %15 = vector.shape_cast %14 : vector<8x24xf32> to vector<1x8x24xf32>
    %cst_6 = arith.constant dense<0.000000e+00> : vector<1xf32>
    %16 = vector.multi_reduction <add>, %15, %cst_6 [1, 2] : vector<1x8x24xf32> to vector<1xf32>
    %17 = vector.shape_cast %16 : vector<1xf32> to vector<1x1x1xf32>
    %18 = vector.extract %17[0, 0, 0] : f32 from vector<1x1x1xf32>
    %cst_7 = arith.constant 0.00520833349 : f32
    %19 = arith.mulf %18, %cst_7 : f32
    %c0_8 = arith.constant 0 : index
    %c0_9 = arith.constant 0 : index
    %20 = memref.load %arg3[%c0_8, %c0_9] : memref<1x1xf32, #tpu.memory_space<smem>>
    memref.store %19, %arg3[%c0_8, %c0_9] : memref<1x1xf32, #tpu.memory_space<smem>>
    return
  }
}

</mosaic_0001>

<bundles_post_ra>
// kernel: tpu_custom_call.1
= control target key start
LH: loop header
LB: loop body
LE: loop exit
PB: predicated region body
PF: predicated region fallthrough
CT: control target
= control target key end

     0   :  { %8 = vsyncpa [#allocation3], 0  ;;  %s209_s0 = inlined_call_operand.hbm [shape: f32[8,24], index: 0, kind: input, shape index: {}]   ;;  %s210_s1 = inlined_call_operand.hbm [shape: f32[8,24], index: 1, kind: input, shape index: {}]   ;;  %s211_s2 = inlined_call_operand.vmem [shape: f32[1,24], index: 2, kind: input, shape index: {}]   ;;  %s212_s3 = inlined_call_operand.hbm [shape: f32[1,1], index: 3, kind: output, shape index: {}]  }
   0x1   :  { %9 = vsyncpa [#allocation6], 0 }
   0x2   :  { %10 = vsyncpa [#allocation4], 0  ;;  %s16_s14 = sshll.u32 %s209_s0, 4  ;;  %s174_s15 = smov [#allocation2]   ;;  %s17_s14 = int_to_ptr.hbm [resolvable:$true] %s16_s14 }
   0x3   :  { %s18_s16 = sshll.u32 %s174_s15, 4  ;;  %s27_s19 = sshll.u32 %s210_s1, 4  ;;  %s19_s16 = int_to_ptr.vmem [resolvable:$true] %s18_s16  ;;  %s28_s19 = int_to_ptr.hbm [resolvable:$true] %s27_s19 }
   0x4   :  { %21 = dma.hbm_to_vmem [thread:$0]  %s17_s14, 128, %s19_s16, [#allocation3]  }
   0x5   :  { %s175_s20 = smov [#allocation5]  }
   0x6   :  { %s29_s21 = sshll.u32 %s175_s20, 4  ;;  %s30_s21 = int_to_ptr.vmem [resolvable:$true] %s29_s21 }
   0x7   :  { %32 = dma.hbm_to_vmem [thread:$0]  %s28_s19, 128, %s30_s21, [#allocation6]  }
   0x8   :  { %168 = dma.done.wait [#allocation3], 128  }
   0x9   :  { %169 = vsyncadd [#allocation3], 4294967168 }
   0xa   :  { %170 = dma.done.wait [#allocation6], 128  }
   0xb   :  { %171 = vsyncadd [#allocation6], 4294967168  ;;  %v43_v0 = vld [vmem:[#allocation2] sm:$0xff]  ;;  %v44_v7 = vld [vmem:[#allocation5] sm:$0xff]  ;;  %vm67_vm1 = vcmask 195584   ;;  %s86_s24 = sshll.u32 %s212_s3, 4  ;;  %s87_s24 = int_to_ptr.hbm [resolvable:$true] %s86_s24 }
   0xc   :  { %v49_v1 = vand.u32 2147483647, %v43_v0  ;;  %v46_v9 = vmax.f32 %v43_v0, 0.0  ;;  %v47_v10 = vmul.f32 %v44_v7, %v43_v0  ;;  %v103_v16 = vld [vmem:[%s211_s2] ss:$0 sm:$0xff]  ;;  %s176_s26 = smov [#allocation7]  }
   0xe   :  { %v50_v2 = vsub.f32 0.0, %v49_v1  ;;  %v48_v14 = vsub.f32 %v46_v9, %v47_v10 }
  0x10   :  { %v51_v3 = vmul.f32 1.442695, %v50_v2 }
  0x12   :  { %104 = vpow2.f32 %v51_v3 }
  0x18   :  { %v105_v4 = vpop.eup %104 }
  0x19   :  { %v53_v5 = vadd.f32 1.0, %v105_v4  ;;  %v56_v6 = vmul.f32 -0.5, %v105_v4  ;;  %v59_v11 = vand.u32 2147483647, %v105_v4 }
  0x1b   :  { %106 = vlog2.f32 %v53_v5  ;;  %v57_v8 = vadd.f32 1.0, %v56_v6  ;;  %vm60_vm0 = vcmp.lt.f32.partialorder %v59_v11, 0.0004427343 }
  0x1d   :  { %v58_v12 = vmul.f32 %v105_v4, %v57_v8 }
  0x21   :  { %v107_v13 = vpop.eup %106 }
  0x22   :  { %v55_v15 = vmul.f32 0.6931472, %v107_v13 }
  0x24   :  { %v61_v17 = vsel %vm60_vm0, %v58_v12, %v55_v15 }
  0x25   :  { %v62_v18 = vadd.f32 %v61_v17, %v48_v14 }
  0x27   :  { %v66_v19 = vmul.f32 %v103_v16, %v62_v18 }
  0x29   :  { %v68_v20 = vsel %vm67_vm1, %v66_v19, 0.0 }
  0x2a   :  { %69 = vadd.xlane.f32.xlu0 %v68_v20 }
  0x9d   :  { %v70_v21 = vpop.xlane.xlu0 %69 }
  0x9e   :  { %v71_v22 = vrot.slane %v70_v21, 4 }
  0xa0   :  { %v72_v23 = vadd.f32 %v71_v22, %v70_v21 }
  0xa2   :  { %v73_v24 = vrot.slane %v72_v23, 2 }
  0xa4   :  { %v74_v25 = vadd.f32 %v73_v24, %v72_v23 }
  0xa6   :  { %v75_v26 = vrot.slane %v74_v25, 1 }
  0xa8   :  { %v76_v27 = vadd.f32 %v75_v26, %v74_v25 }
  0xaa   :  { %98 = vpush %v76_v27 }
  0xdb   :  { %s99_s25 = spop %98 }
  0xdc   :  { %s78_s2 = smul.f32 0.0052083335, %s99_s25 }
  0xde   :  { %80 = sst [smem:[#allocation7]] %s78_s2 }
  0xdf   :  { %89 = dma.smem_to_hbm %s176_s26, 16, %s87_s24, [#allocation4]  }
  0xe0   :  { %172 = dma.done.wait [#allocation4], 16  }
  0xe1   :  { %173 = vsyncadd [#allocation4], 4294967280 }
  0xe2   :  { %94 = sfence }
  0xe3   :  { %95 = vsyncpa [#allocation3], 1 }
  0xe4   :  { %96 = vsyncpa [#allocation6], 1 }
  0xe5   :  { %97 = vsyncpa [#allocation4], 1 }

</bundles_post_ra>
